<compile_context>
chip_gen: v6e
topology: v6e:2x2x1
jax: 0.10.0
libtpu: 0.0.40
codegen_flags: <defaults>
</compile_context>

<pallas_src>
import jax
import jax.numpy as jnp
import numpy as np
from jax.experimental import pallas as pl
from jax.experimental.pallas import tpu as pltpu

N_ELEMENTS = 85          # periodic-table rows used by the module
VOCAB = N_ELEMENTS + 1   # mappings / properties tables have a leading padding row
Z_EMB = 32
PERIOD_EMB = 32
GROUP_EMB = 32
N_PROPS = 14             # len(PhysRef.default_properties)
FULL_EMB = Z_EMB + N_PROPS + PERIOD_EMB + GROUP_EMB   # 110

VOCAB_PAD = 128          # fused-table rows padded up to one MXU-friendly K=128
MAX_TILE_N = 2048        # atoms per grid step (cap; ~4 MiB total VMEM w/ dbl-buffering)


def phys_embedding_kernel(z_ref, tab_ref, out_ref):
    """One grid step: tile_n atoms -> tile_n fused embedding rows.

    z_ref   : [tile_n, 1]          int32 atomic numbers (padded rows carry 0)
    tab_ref : [128, 110]           f32 fused lookup table (VMEM-resident)
    out_ref : [tile_n, 110]        f32 output tile (final width, no post-slice)
    """
    z = z_ref[...]                                   # [tile_n, 1]
    n = z.shape[0]
    v = tab_ref.shape[0]                             # 128 (padded vocab)
    # one-hot over the padded vocab drives the single gather on the MXU
    oh = (z == jax.lax.broadcasted_iota(jnp.int32, (n, v), 1)).astype(jnp.float32)
    out_ref[...] = jnp.dot(oh, tab_ref[...], preferred_element_type=jnp.float32)


def make_params(key):
    k1, k2, k3, k4 = jax.random.split(key, 4)
    # nn.Embedding(85, 32) default init ~ N(0,1)
    z_table = jax.random.normal(k1, (N_ELEMENTS, Z_EMB), dtype=jnp.float32)
    # properties_mapping: row 0 zeros, then standardized physical properties
    prop_vals = jax.random.normal(k2, (N_ELEMENTS, N_PROPS), dtype=jnp.float32)
    prop_table = jnp.concatenate([jnp.zeros((1, N_PROPS), jnp.float32), prop_vals], axis=0)

    # synthetic periodic-table period / group mappings (index 0 -> 1, like the module)
    z_nums = jnp.arange(1, VOCAB)
    period = (1 + (z_nums > 2) + (z_nums > 10) + (z_nums > 18)
              + (z_nums > 36) + (z_nums > 54)).astype(jnp.int32)
    period_mapping = jnp.concatenate([jnp.ones((1,), jnp.int32), period])        # [86]
    n_periods = int(period_mapping.max()) + 1
    group = (1 + (z_nums * 7) % 19).astype(jnp.int32)                            # in [1, 19]
    group_mapping = jnp.concatenate([jnp.ones((1,), jnp.int32), group])          # [86]
    n_groups = int(group_mapping.max()) + 1

    period_table = jax.random.normal(k3, (n_periods, PERIOD_EMB), dtype=jnp.float32)
    group_table = jax.random.normal(k4, (n_groups, GROUP_EMB), dtype=jnp.float32)
    return dict(z_table=z_table, prop_table=prop_table,
                period_mapping=period_mapping, group_mapping=group_mapping,
                period_table=period_table, group_table=group_table)


def fuse_tables(params):
    """Host-side composition of all static lookups into one padded table.

    fused[v] = concat(z_tab[v], prop_tab[v], period_tab[period_map[v]],
                      group_tab[group_map[v]])  for v in [0, VOCAB)
    Rows are zero-padded to VOCAB_PAD=128 for an aligned K=128 MXU
    contraction; columns stay at the true FULL_EMB=110 so the kernel writes
    the final output width directly (no post-kernel slice).
    """
    # z embedding table has 85 rows; row 85 clamps to row 84 (matches a
    # clamping gather), any higher padded row stays zero.
    z_tab = jnp.concatenate([params['z_table'], params['z_table'][-1:]], axis=0)  # [86, 32]
    period_by_z = params['period_table'][params['period_mapping']]   # [86, 32]
    group_by_z = params['group_table'][params['group_mapping']]      # [86, 32]
    fused = jnp.concatenate(
        [z_tab, params['prop_table'], period_by_z, group_by_z], axis=-1)   # [86, 110]
    fused = jnp.pad(fused, ((0, VOCAB_PAD - VOCAB), (0, 0)))               # [128, 110]
    return fused


def _choose_tile(n, max_tile=MAX_TILE_N):
    """Pick atoms-per-step: big enough to beat per-step overhead, small enough
    to keep >= 2 grid steps (v7x has 2 TensorCores) and stay in scoped VMEM."""
    if n < 16:
        return max(n, 1)                       # single full-extent block
    tile = 1 << ((n - 1).bit_length() - 1)     # largest power of two < n  -> >= 2 steps
    return int(min(max_tile, tile))


def phys_embedding(z, fused_table):
    """Forward: z (int, [N]) -> [N, 110] float32 concatenated embedding."""
    z = z.astype(jnp.int32)
    n = z.shape[0]
    tile_n = _choose_tile(n)
    grid = pl.cdiv(n, tile_n)
    n_pad = grid * tile_n
    # pad the (tiny) index input so every block read is in-bounds; output rows
    # beyond n are discarded by Pallas' masked partial-block writes.
    z_col = jnp.pad(z, (0, n_pad - n)).reshape(n_pad, 1)

    cost = pl.CostEstimate(
        flops=2 * n_pad * VOCAB_PAD * FULL_EMB,
        transcendentals=0,
        bytes_accessed=n_pad * 4 + n * FULL_EMB * 4 + VOCAB_PAD * FULL_EMB * 4,
    )

    out = pl.pallas_call(
        phys_embedding_kernel,
        out_shape=jax.ShapeDtypeStruct((n, FULL_EMB), jnp.float32),
        grid=(grid,),
        in_specs=[
            pl.BlockSpec((tile_n, 1), lambda i: (i, 0)),              # z tile
            pl.BlockSpec((VOCAB_PAD, FULL_EMB), lambda i: (0, 0)),    # table: constant block -> VMEM-resident
        ],
        out_specs=pl.BlockSpec((tile_n, FULL_EMB), lambda i: (i, 0)),  # final width, no post-slice
        compiler_params=pltpu.CompilerParams(
            dimension_semantics=("parallel",)),                        # shard rows over TCs
        cost_estimate=cost,
    )(z_col, fused_table)
    return out
    # TODO(synk): tag / properties_proj / final_proj branches are disabled in the
    # default config (sizes 0) and are therefore not emitted.


if __name__ == "__main__":
    key = jax.random.PRNGKey(0)
    pkey, zkey = jax.random.split(key)
    params = make_params(pkey)
    fused_table = fuse_tables(params)

    # batch of 32 atoms, atomic numbers in [1, 84]
    z = jax.random.randint(zkey, (32,), minval=1, maxval=N_ELEMENTS)

    out = phys_embedding(z, fused_table)
    out = jax.block_until_ready(out)

    # pure-JAX reference of the PyTorch forward (unfused tables)
    ref = jnp.concatenate(
        [params['z_table'][z],
         params['prop_table'][z],
         params['period_table'][params['period_mapping'][z]],
         params['group_table'][params['group_mapping'][z]]], axis=-1)

    assert out.shape == (32, FULL_EMB), out.shape
    np.testing.assert_allclose(np.asarray(out), np.asarray(ref), rtol=1e-5, atol=1e-5)
    print("KERNEL_OK")
</pallas_src>

<mosaic_0001>
module attributes {stable_mosaic.version = 11 : i64} {
  func.func @phys_embedding_kernel(%arg0: i32, %arg1: memref<16x1xi32, #tpu.memory_space<vmem>>, %arg2: memref<128x110xf32, #tpu.memory_space<vmem>>, %arg3: memref<16x110xf32, #tpu.memory_space<vmem>>) attributes {dimension_semantics = [#tpu.dimension_semantics<parallel>], iteration_bounds = array<i64: 2>, scalar_prefetch = 0 : i64, scratch_operands = 0 : i64, tpu.core_type = #tpu.core_type<tc>, window_params = [{transform_indices = @transform_0, window_bounds = array<i64: 16, 1>}, {pipeline_mode = #tpu.pipeline_mode<synchronous>, transform_indices = @transform_1, window_bounds = array<i64: 128, 110>}, {transform_indices = @transform_2, window_bounds = array<i64: 16, 110>}]} {
    %c0 = arith.constant 0 : index
    %c0_0 = arith.constant 0 : index
    %0 = vector.load %arg1[%c0, %c0_0] : memref<16x1xi32, #tpu.memory_space<vmem>>, vector<16x1xi32>
    %1 = tpu.iota {dimensions = array<i32: 1>} : vector<16x128xi32>
    %2 = vector.broadcast %0 : vector<16x1xi32> to vector<16x128xi32>
    %3 = arith.cmpi eq, %2, %1 : vector<16x128xi32>
    %4 = arith.extui %3 : vector<16x128xi1> to vector<16x128xi32>
    %5 = arith.sitofp %4 : vector<16x128xi32> to vector<16x128xf32>
    %c0_1 = arith.constant 0 : index
    %c0_2 = arith.constant 0 : index
    %6 = vector.load %arg2[%c0_1, %c0_2] : memref<128x110xf32, #tpu.memory_space<vmem>>, vector<128x110xf32>
    %cst = arith.constant dense<0.000000e+00> : vector<16x110xf32>
    %7 = tpu.matmul %5, %6, %cst {dimension_numbers = #tpu.dot_dimension_numbers<[1], [0], [0], [1], [0, 0, 1, 1], [], []>} : vector<16x128xf32>, vector<128x110xf32>, vector<16x110xf32> -> vector<16x110xf32>
    %c0_3 = arith.constant 0 : index
    %c0_4 = arith.constant 0 : index
    %8 = vector.load %arg3[%c0_3, %c0_4] : memref<16x110xf32, #tpu.memory_space<vmem>>, vector<16x110xf32>
    tpu.vector_store %arg3[%c0_3, %c0_4], %7 {strides = array<i32>} : memref<16x110xf32, #tpu.memory_space<vmem>>, vector<16x110xf32>,
    return
  }
  func.func @transform_0(%arg0: i32) -> (i32, i32) {
    %c0_i32 = arith.constant 0 : i32
    %c0_i32_0 = arith.constant 0 : i32
    return %arg0, %c0_i32 : i32, i32
  }
  func.func @transform_1(%arg0: i32) -> (i32, i32) {
    %c0_i32 = arith.constant 0 : i32
    %c0_i32_0 = arith.constant 0 : i32
    %c0_i32_1 = arith.constant 0 : i32
    return %c0_i32, %c0_i32_0 : i32, i32
  }
  func.func @transform_2(%arg0: i32) -> (i32, i32) {
    %c0_i32 = arith.constant 0 : i32
    %c0_i32_0 = arith.constant 0 : i32
    return %arg0, %c0_i32 : i32, i32
  }
}

</mosaic_0001>

<bundles_post_ra>
// kernel: tpu_custom_call.1
= control target key start
LH: loop header
LB: loop body
LE: loop exit
PB: predicated region body
PF: predicated region fallthrough
CT: control target
= control target key end

     0   :  { %7 = vsyncpa [#allocation3], 0  ;;  %s676_s0 = inlined_call_operand.vmem [shape: s32[32,1], index: 0, kind: input, shape index: {}]   ;;  %s677_s1 = inlined_call_operand.vmem [shape: f32[128,110], index: 1, kind: input, shape index: {}]   ;;  %s678_s2 = inlined_call_operand.hbm [shape: f32[32,110], index: 2, kind: output, shape index: {}]  }
   0x1   :  { %9 = vsyncpa [#allocation3 + $0x1], 0  ;;  %s527_s9 = smov 0   ;;  %s529_s10 = smov 0  }
   0x2   :  { %s531_s11 = smov 0   ;;  %s533_s12 = smov 0  }
   0x3 LB: > { %s548_s13 = sadd.s32 4294967295, %s505_s12   ;;  %s331_s14 = sadd.s32 4294967294, %s505_s12   ;;  %s505_s12 = sphi %s533_s12, %s684_s12   ;;  %s501_s11 = sphi %s531_s11, %s683_s11   ;;  %s497_s10 = sphi %s529_s10, %s682_s10   ;;  %s493_s9 = sphi %s527_s9, %s681_s9  }
   0x4   : > { %s552_s15 = sadd.s32 1, %s505_s12   ;;  %s69_s16 = sadd.s32 1, %s501_s11 }
   0x5   : > { %s66_s17 = ssub.s32 %s505_s12, %s552_s15  ;;  %p79_p0 = scmp.ne.s32.totalorder %s501_s11, %s497_s10 }
   0x6   : > { %p67_p1 = scmp.eq.s32.totalorder %s66_s17, 0  ;;  %p80_p2 = scmp.eq.s32.totalorder %s548_s13, 1 }
   0x7   : > { %p85_p3 = scmp.ne.s32.totalorder %s497_s10, %s493_s9  ;;  %p86_p4 = scmp.eq.s32.totalorder %s331_s14, 1 }
   0x8   : > { %s563_s18 = scalar_select %p67_p1, %s501_s11, %s69_s16  }
   0x9   : > { %p565_p5 = por %p80_p2, %p79_p0  ;;  %p569_p6 = por %p86_p4, %p85_p3 }
   0xa   : > { %p334_p7 = scmp.ge.s32.totalorder %s505_s12, 1  ;;  %p116_p8 = scmp.lt.s32.totalorder %s505_s12, 3 }
   0xc   : > { %p117_p9 = pnand %p334_p7, %p116_p8 }
   0xd   : > { %s336_s21 = sshll.u32 (!%p117_p9), %s548_s13, 1  ;;  %s135_s17 = sand.u32 (!%p117_p9), 1, %s497_s10  }
   0xe   : > { %120 = sbr.rel (%p117_p9) target bundleno = 361 (0x169), region = 28  ;;  %p139_p10 = scmp.lt.s32.totalorder (!%p117_p9), %s336_s21, 3 }
   0xf   : > { %s347_s24 = sshll.u32 (!%p117_p9), %s548_s13, 8  ;;  %s636_s28 = scalar_lea.sflag (!%p117_p9), [#allocation3], %s135_s17 }
  0x10   : > { %s634_s27 = scalar_lea.hbm (!%p117_p9), %s678_s2, %s347_s24  ;;  %s509_s13 = smov (!%p117_p9), [#allocation2]  }
  0x13   : > { %v176_v0 = vld [vmem:[%s677_s1 + $0x78] sm:$0xff]  ;;  %v175_v1 = vld [vmem:[%s677_s1 + $0x70] sm:$0xff]  ;;  %v507_v2 = vmov 0   ;;  %v174_v3 = vld [vmem:[%s677_s1 + $0x68] sm:$0xff]  ;;  %s686_s21 = smov (!%p139_p10, %s336_s21), 3  ;;  %v147_v19 = vlaneseq  ;;  %v508_v22 = vmov 1.0  }
  0x14   : > { %444 = vset.pattern.permute.xlu0 %v507_v2  ;;  %366 = vmatprep.subr.mxu0 %v176_v0  ;;  %v173_v4 = vld [vmem:[%s677_s1 + $0x60] sm:$0xff]  ;;  %s337_s30 = sshll.u32 %s686_s21, 3  ;;  %v172_v5 = vld [vmem:[%s677_s1 + $0x58] sm:$0xff]  ;;  %v171_v7 = vld [vmem:[%s677_s1 + $0x50] sm:$0xff]  ;;  %s335_s21 = sshll.u32 %s135_s17, 4  ;;  %vm252_vm2 = vcmask 900096  }
  0x15   : > { %367 = vmatpush3.msra.mxu0 %v176_v0  ;;  %s142_s5 = scalar_lea.vmem %s676_s0, %s337_s30  ;;  %v170_v9 = vld [vmem:[%s677_s1 + $0x48] sm:$0xff]  ;;  %v169_v10 = vld [vmem:[%s677_s1 + $0x40] sm:$0xff]  ;;  %v168_v11 = vld [vmem:[%s677_s1 + $0x38] sm:$0xff]  ;;  %v148_v20 = vand.u32 127, %v147_v19  ;;  %s137_s22 = scalar_lea.vmem [#allocation2], %s335_s21 }
  0x16   : > { %368 = vmatprep.subr.mxu0 %v175_v1  ;;  %v145_v6 = vld [vmem:[%s142_s5] sm:$0xff]  ;;  %v146_v8 = vld [vmem:[%s142_s5 + $0x8] sm:$0xff]  ;;  %v167_v12 = vld [vmem:[%s677_s1 + $0x30] sm:$0xff]  ;;  %s269_s23 = sshll.u32 %s137_s22, 4  ;;  %s449_s30 = sshll.u32 %s509_s13, 4  ;;  %s629_s23 = int_to_ptr.vmem [resolvable:$true] %s269_s23  ;;  %s450_s30 = int_to_ptr.vmem [resolvable:$false] %s449_s30 }
  0x17   : > { %369 = vmatpush3.msra.mxu0 %v175_v1  ;;  %150 = vperm.xlu0 %444, %v145_v6   ;;  %v166_v13 = vld [vmem:[%s677_s1 + $0x28] sm:$0xff]  ;;  %v165_v14 = vld [vmem:[%s677_s1 + $0x20] sm:$0xff]  ;;  %v164_v15 = vld [vmem:[%s677_s1 + $0x18] sm:$0xff]  ;;  %s445_s29 = scalar_lea.vmem %s629_s23, 256  ;;  %s451_s3 = scalar_lea.vmem %s450_s30, 512 }
  0x18   : > { %370 = vmatprep.subr.mxu0 %v174_v3  ;;  %v163_v16 = vld [vmem:[%s677_s1 + $0x10] sm:$0xff]  ;;  %v162_v17 = vld [vmem:[%s677_s1 + $0x8] sm:$0xff]  ;;  %v161_v18 = vld [vmem:[%s677_s1] sm:$0xff]  ;;  %p446_p11 = scmp.ne.s32.totalorder %s629_s23, %s445_s29  ;;  %p452_p0 = scmp.lt.s32.totalorder %s629_s23, %s450_s30 }
  0x19   : > { %371 = vmatpush3.msra.mxu0 %v174_v3  ;;  %p453_p1 = scmp.lt.s32.totalorder %s451_s3, %s445_s29 }
  0x1a   : > { %372 = vmatprep.subr.mxu0 %v173_v4  ;;  %p447_p12 = pnand %p446_p11, %p565_p5 }
  0x1b   : > { %373 = vmatpush3.msra.mxu0 %v173_v4  ;;  %153 = vperm.xlu0 %444, %v146_v8   ;;  %p454_p2 = por %p453_p1, %p452_p0 }
  0x1c   : > { %374 = vmatprep.subr.mxu0 %v172_v5  ;;  %p448_p13 = pneg %p447_p12 }
  0x1d   : > { %375 = vmatpush3.msra.mxu0 %v172_v5 }
  0x1e   : > { %376 = vmatprep.subr.mxu0 %v171_v7  ;;  %p455_p3 = pnand %p454_p2, %p448_p13 }
  0x1f   : > { %377 = vmatpush3.msra.mxu0 %v171_v7 }
  0x20   : > { %378 = vmatprep.subr.mxu0 %v170_v9 }
  0x21   : > { %379 = vmatpush3.msra.mxu0 %v170_v9 }
  0x22   : > { %380 = vmatprep.subr.mxu0 %v169_v10 }
  0x23   : > { %381 = vmatpush3.msra.mxu0 %v169_v10 }
  0x24   : > { %382 = vmatprep.subr.mxu0 %v168_v11 }
  0x25   : > { %383 = vmatpush3.msra.mxu0 %v168_v11 }
  0x26   : > { %384 = vmatprep.subr.mxu0 %v167_v12 }
  0x27   : > { %385 = vmatpush3.msra.mxu0 %v167_v12 }
  0x28   : > { %386 = vmatprep.subr.mxu0 %v166_v13 }
  0x29   : > { %387 = vmatpush3.msra.mxu0 %v166_v13 }
  0x2a   : > { %388 = vmatprep.subr.mxu0 %v165_v14 }
  0x2b   : > { %389 = vmatpush3.msra.mxu0 %v165_v14 }
  0x2c   : > { %390 = vmatprep.subr.mxu0 %v164_v15 }
  0x2d   : > { %391 = vmatpush3.msra.mxu0 %v164_v15 }
  0x2e   : > { %392 = vmatprep.subr.mxu0 %v163_v16 }
  0x2f   : > { %393 = vmatpush3.msra.mxu0 %v163_v16 }
  0x30   : > { %394 = vmatprep.subr.mxu0 %v162_v17 }
  0x31   : > { %395 = vmatpush3.msra.mxu0 %v162_v17 }
  0x32   : > { %396 = vmatprep.subr.mxu0 %v161_v18 }
  0x33   : > { %397 = vmatpush3.msra.mxu0 %v161_v18 }
  0x92   : > { %v151_v21 = vpop.permute.xlu0 %150 }
  0x93   : > { %vm155_vm0 = vcmp.eq.s32.totalorder %v151_v21, %v148_v20 }
  0x94   : > { %398 = vmatprep.mubr.msk.f32.mxu0 %vm155_vm0, %v508_v22 }
  0x96   : > { %v154_v23 = vpop.permute.xlu0 %153 }
  0x97   : > { %vm156_vm1 = vcmp.eq.s32.totalorder %v154_v23, %v148_v20 }
  0x98   : > { %399 = vmatmul.mubr.msk.f32.vlgmr.msra.gmra.mxu0 %vm156_vm1, %v508_v22 }
 0x158   : > { %v400_v24 = vpop.f32.mrf.mxu0 }
 0x159   : > { %254 = vst.msk [vmem:[%s137_s22 + $0x8] sm:$0xff] %vm252_vm2, %v400_v24 }
 0x15a   : > { %v243_v25 = vpop.f32.mrf.mxu0 }
 0x15b   : > { %253 = vst.msk [vmem:[%s137_s22] sm:$0xff] %vm252_vm2, %v243_v25 }
 0x15c   : > { %458 = shalt.err (!%p455_p3)
}
 0x15d   : > { %s459_s4 = scalar_lea.hbm %s634_s27, 256  ;;  %s463_s7 = scalar_lea.hbm %s678_s2, 512 }
 0x15e   : > { %p460_p4 = scmp.ne.s32.totalorder %s634_s27, %s459_s4  ;;  %p464_p9 = scmp.lt.s32.totalorder %s634_s27, %s678_s2 }
 0x15f   : > { %p465_p10 = scmp.lt.s32.totalorder %s463_s7, %s459_s4 }
 0x160   : > { %p461_p7 = pnand %p460_p4, %p565_p5 }
 0x161   : > { %p466_p11 = por %p465_p10, %p464_p9 }
 0x162   : > { %p462_p8 = pneg %p461_p7 }
 0x164   : > { %p467_p12 = pnand %p466_p11, %p462_p8 }
 0x166   : > { %470 = shalt.err (!%p467_p12)
}
 0x167   : > { %s510_s16 = smov 128   ;;  %s511_s17 = smov 8  }
 0x168   : > { %401 = dma.vmem_to_hbm [thread:$0]  (%p565_p5), %s629_s23, 256, %s634_s27, %s636_s28, %s510_s16, %s510_s16, %s511_s17  }
 0x169 PF: > { %p407_p13 = scmp.ge.s32.totalorder %s505_s12, 2  ;;  %s284_s21 = sand.u32 1, %s493_s9  }
 0x16a   : > { %s285_s22 = scalar_lea.sflag [#allocation3], %s284_s21 }
 0x16b   : > { %p404_p0 = pnand %p407_p13, %p569_p6 }
 0x16d   : > { %p405_p1 = pneg %p404_p0 }
 0x16f   : > { %488 = dma.done.wait (%p405_p1), %s285_s22, 256  }
 0x170   : > { %490 = vsyncadd (%p405_p1), %s285_s22, 4294967040  ;;  %p12_p2 = scmp.ge.s32.totalorder %s552_s15, 4   ;;  %s681_s9 = smov %s497_s10 }
 0x171   : > { %s682_s10 = smov %s501_s11  ;;  %s683_s11 = smov %s563_s18 }
 0x172   : > { %s684_s12 = smov %s552_s15  ;;  %14 = sbr.rel (!%p12_p2) target bundleno = 3 (0x3), region = 63 }
 0x177   :  { %290 = vsyncpa [#allocation3], 1 }
 0x178   :  { %292 = vsyncpa [#allocation3 + $0x1], 1 }

</bundles_post_ra>
